<compile_context>
chip_gen: v7x
topology: tpu7x:2x2x1
jax: 0.10.0
libtpu: 0.0.40
codegen_flags: <defaults>
</compile_context>

<pallas_src>
import functools

import jax
import jax.numpy as jnp
from jax.experimental import pallas as pl
from jax.experimental.pallas import tpu as pltpu

_LANE = 128
_MAX_TC = 2048                   # lane-dim cap: keeps lane-fold unroll <= 16
_TARGET_BLOCK_BYTES = 4 << 20    # ~4 MiB NATIVE bytes per stream per grid step
_MAX_BLOCK_ELEMS = 1 << 20       # bounds in-kernel f32 temporaries to <= 4 MiB
_W_COLS = 8                      # replicate weights to 8 cols -> 32-byte DMA granules
_VMEM_LIMIT_BYTES = 48 << 20     # explicit scoped-VMEM limit (v5e default is 16 MiB)


def _round_up(x, m):
    return (x + m - 1) // m * m


def _wl1_kernel(o_ref, t_ref, w_ref, part_ref, *, tr, tc, rows, cols,
                needs_row_mask, needs_col_mask):
    # Upcast inside the kernel; inputs stream at their native dtype.
    o = o_ref[...].astype(jnp.float32)
    t = t_ref[...].astype(jnp.float32)
    w = w_ref[:, 0:1]                     # (tr, 1) f32 per-row weights
    contrib = jnp.abs(o - t) * w          # (tr, tc), lane-broadcast multiply

    # Zero contributions from out-of-bounds rows/cols of ragged boundary
    # blocks.  Traced only when the shapes actually need it.  Must stay a
    # true select: OOB padding may contain NaN/Inf.
    if needs_row_mask or needs_col_mask:
        mask = None
        if needs_row_mask:
            row_ids = (jax.lax.broadcasted_iota(jnp.int32, (tr, tc), 0)
                       + pl.program_id(0) * tr)
            mask = row_ids < rows
        if needs_col_mask:
            col_ids = (jax.lax.broadcasted_iota(jnp.int32, (tr, tc), 1)
                       + pl.program_id(1) * tc)
            col_mask = col_ids < cols
            mask = col_mask if mask is None else mask & col_mask
        contrib = jnp.where(mask, contrib, 0.0)

    # Fold the block to a lane-dense (8, 128) partial sum with pure vreg
    # (VPU) adds — the reshape splits exactly on the sublane tile boundary.
    # The single cross-lane reduction happens later in plain JAX over the
    # tiny partials array, keeping the grid fully parallel.
    folded = contrib.reshape(tr // 8, 8, tc).sum(axis=0)        # (8, tc)
    part = folded[:, 0:_LANE]
    for g in range(1, tc // _LANE):                             # <= 16-way unroll
        part = part + folded[:, g * _LANE:(g + 1) * _LANE]
    part_ref[...] = part


def weighted_l1_loss_pallas(output, target, weights):
    """output, target: (N, C, H, W); weights broadcastable to (N, C, 1, 1)."""
    assert output.shape == target.shape
    N, C, H, W = output.shape
    rows, cols = N * C, H * W

    # Per-(n, c) weights: only this tiny vector is materialized — the full
    # NCHW broadcast never touches HBM.
    # TODO(synk): weights varying over H/W would need a full weight stream.
    w_rows = jnp.broadcast_to(jnp.asarray(weights, dtype=jnp.float32),
                              (N, C, 1, 1)).reshape(rows)

    itemsize = jnp.dtype(output.dtype).itemsize
    sub = {4: 8, 2: 16, 1: 32}.get(itemsize, 8)   # native sublane granularity

    # Tile heuristic: widen tc toward full-row coverage first (contiguous DMA
    # runs, no column mask), then grow tr until the block hits the native-byte
    # budget / element cap.
    tc = min(max(_round_up(cols, _LANE), _LANE), _MAX_TC)
    block_elems = min(_TARGET_BLOCK_BYTES // itemsize, _MAX_BLOCK_ELEMS)
    tr_cap = max(sub, (block_elems // tc) // sub * sub)
    tr = min(_round_up(rows, sub), tr_cap)

    grid_r = pl.cdiv(rows, tr)
    grid_c = pl.cdiv(cols, tc)

    # Contiguous NCHW -> (N*C, H*W) reshape is free; no wrapper-side
    # astype / pad / broadcast copies of the big tensors.
    o2 = output.reshape(rows, cols)
    t2 = target.reshape(rows, cols)
    w2 = jnp.broadcast_to(
        jnp.pad(w_rows, (0, grid_r * tr - rows)).reshape(grid_r * tr, 1),
        (grid_r * tr, _W_COLS))

    kernel = functools.partial(
        _wl1_kernel, tr=tr, tc=tc, rows=rows, cols=cols,
        needs_row_mask=(rows % tr != 0), needs_col_mask=(cols % tc != 0))

    cost = pl.CostEstimate(
        flops=3 * rows * cols,
        transcendentals=0,
        bytes_accessed=(2 * rows * cols * itemsize
                        + grid_r * tr * _W_COLS * 4
                        + grid_r * grid_c * 8 * _LANE * 4),
    )

    partials = pl.pallas_call(
        kernel,
        out_shape=jax.ShapeDtypeStruct((grid_r, grid_c, 8, _LANE), jnp.float32),
        grid_spec=pltpu.PrefetchScalarGridSpec(
            num_scalar_prefetch=0,
            grid=(grid_r, grid_c),
            in_specs=[
                pl.BlockSpec((tr, tc), lambda i, j: (i, j)),
                pl.BlockSpec((tr, tc), lambda i, j: (i, j)),
                pl.BlockSpec((tr, _W_COLS), lambda i, j: (i, 0)),
            ],
            out_specs=pl.BlockSpec((None, None, 8, _LANE),
                                   lambda i, j: (i, j, 0, 0)),
        ),
        compiler_params=pltpu.CompilerParams(
            dimension_semantics=("parallel", "parallel"),
            vmem_limit_bytes=_VMEM_LIMIT_BYTES,
        ),
        cost_estimate=cost,
    )(o2, t2, w2)

    return jnp.sum(partials) / jnp.float32(rows * cols)


if __name__ == "__main__":
    key = jax.random.PRNGKey(0)

    def check(shape, wshape, tol=1e-5):
        N, C, H, W = shape
        k1, k2 = jax.random.split(jax.random.fold_in(key, H * W + C), 2)
        output = jax.random.normal(k1, shape, dtype=jnp.float32)
        target = jax.random.normal(k2, shape, dtype=jnp.float32)
        weights = (jnp.arange(1, C + 1, dtype=jnp.float32) / C).reshape(wshape)
        loss = weighted_l1_loss_pallas(output, target, weights)
        jax.block_until_ready(loss)
        ref = jnp.mean(jnp.abs(output - target) * weights)
        assert jnp.allclose(loss, ref, rtol=tol, atol=tol), (shape, loss, ref)

    # Primary small case (module-scale shapes).
    check((2, 4, 16, 16), (1, 4, 1, 1))
    # Aligned case where tc covers the full row (single contiguous DMA run).
    check((2, 4, 32, 32), (1, 4, 1, 1))
    # Multi-block case: cols > _MAX_TC, exercises the parallel 2-D grid.
    check((4, 8, 64, 64), (1, 8, 1, 1))
    # Ragged case (exercises in-kernel boundary masking, no wrapper padding).
    check((2, 3, 10, 12), (1, 3, 1, 1))

    print("KERNEL_OK")
</pallas_src>

<mosaic_0001>
module attributes {stable_mosaic.version = 11 : i64} {
  func.func @_wl1_kernel(%arg0: i32, %arg1: i32, %arg2: memref<8x256xf32, #tpu.memory_space<vmem>>, %arg3: memref<8x256xf32, #tpu.memory_space<vmem>>, %arg4: memref<8x8xf32, #tpu.memory_space<vmem>>, %arg5: memref<1x1x8x128xf32, #tpu.memory_space<vmem>>) attributes {dimension_semantics = [#tpu.dimension_semantics<parallel>, #tpu.dimension_semantics<parallel>], iteration_bounds = array<i64: 1, 1>, scalar_prefetch = 0 : i64, scratch_operands = 0 : i64, tpu.core_type = #tpu.core_type<tc>, window_params = [{transform_indices = @transform_0, window_bounds = array<i64: 8, 256>}, {transform_indices = @transform_1, window_bounds = array<i64: 8, 256>}, {transform_indices = @transform_2, window_bounds = array<i64: 8, 8>}, {transform_indices = @transform_3, window_bounds = array<i64: 1, 1, 8, 128>}]} {
    %c0 = arith.constant 0 : index
    %c0_0 = arith.constant 0 : index
    %0 = vector.load %arg2[%c0, %c0_0] : memref<8x256xf32, #tpu.memory_space<vmem>>, vector<8x256xf32>
    %c0_1 = arith.constant 0 : index
    %c0_2 = arith.constant 0 : index
    %1 = vector.load %arg3[%c0_1, %c0_2] : memref<8x256xf32, #tpu.memory_space<vmem>>, vector<8x256xf32>
    %c0_3 = arith.constant 0 : index
    %c0_4 = arith.constant 0 : index
    %2 = vector.load %arg4[%c0_3, %c0_4] : memref<8x8xf32, #tpu.memory_space<vmem>>, vector<8x1xf32>
    %3 = arith.subf %0, %1 : vector<8x256xf32>
    %4 = math.absf %3 : vector<8x256xf32>
    %5 = vector.broadcast %2 : vector<8x1xf32> to vector<8x256xf32>
    %6 = arith.mulf %4, %5 : vector<8x256xf32>
    %7 = vector.shape_cast %6 : vector<8x256xf32> to vector<1x8x256xf32>
    %cst = arith.constant dense<0.000000e+00> : vector<8x256xf32>
    %8 = vector.multi_reduction <add>, %7, %cst [0] : vector<1x8x256xf32> to vector<8x256xf32>
    %9 = vector.extract_strided_slice %8 {offsets = [0, 0], sizes = [8, 128], strides = [1, 1]} : vector<8x256xf32> to vector<8x128xf32>
    %10 = vector.extract_strided_slice %8 {offsets = [0, 128], sizes = [8, 128], strides = [1, 1]} : vector<8x256xf32> to vector<8x128xf32>
    %11 = arith.addf %9, %10 : vector<8x128xf32>
    %c0_5 = arith.constant 0 : index
    %c0_6 = arith.constant 0 : index
    %c0_7 = arith.constant 0 : index
    %c0_8 = arith.constant 0 : index
    %12 = vector.load %arg5[%c0_5, %c0_6, %c0_7, %c0_8] : memref<1x1x8x128xf32, #tpu.memory_space<vmem>>, vector<1x1x8x128xf32>
    %13 = vector.shape_cast %12 : vector<1x1x8x128xf32> to vector<8x128xf32>
    %14 = vector.shape_cast %11 : vector<8x128xf32> to vector<1x1x8x128xf32>
    tpu.vector_store %arg5[%c0_5, %c0_6, %c0_7, %c0_8], %14 {strides = array<i32>} : memref<1x1x8x128xf32, #tpu.memory_space<vmem>>, vector<1x1x8x128xf32>,
    return
  }
  func.func @transform_0(%arg0: i32, %arg1: i32) -> (i32, i32) {
    %c0_i32 = arith.constant 0 : i32
    return %arg0, %arg1 : i32, i32
  }
  func.func @transform_1(%arg0: i32, %arg1: i32) -> (i32, i32) {
    %c0_i32 = arith.constant 0 : i32
    return %arg0, %arg1 : i32, i32
  }
  func.func @transform_2(%arg0: i32, %arg1: i32) -> (i32, i32) {
    %c0_i32 = arith.constant 0 : i32
    %c0_i32_0 = arith.constant 0 : i32
    return %arg0, %c0_i32 : i32, i32
  }
  func.func @transform_3(%arg0: i32, %arg1: i32) -> (i32, i32, i32, i32) {
    %c0_i32 = arith.constant 0 : i32
    %c0_i32_0 = arith.constant 0 : i32
    %c0_i32_1 = arith.constant 0 : i32
    return %arg0, %arg1, %c0_i32, %c0_i32_0 : i32, i32, i32, i32
  }
}

</mosaic_0001>

<bundles_post_ra>
// kernel: tpu_custom_call.1
= control target key start
LH: loop header
LB: loop body
LE: loop exit
PB: predicated region body
PF: predicated region fallthrough
CT: control target
= control target key end

     0   :  { %8 = vsyncpa [#allocation3], 0  ;;  %s259_s0 = inlined_call_operand.hbm [shape: f32[8,256], index: 0, kind: input, shape index: {}]   ;;  %s260_s1 = inlined_call_operand.hbm [shape: f32[8,256], index: 1, kind: input, shape index: {}]   ;;  %s261_s2 = inlined_call_operand.hbm [shape: f32[8,8], index: 2, kind: input, shape index: {}]   ;;  %s262_s3 = inlined_call_operand.hbm [shape: f32[1,1,8,128], index: 3, kind: output, shape index: {}]  }
   0x1   :  { %9 = vsyncpa [#allocation6], 0 }
   0x2   :  { %10 = vsyncpa [#allocation4], 0  ;;  %s186_s12 = smov [#allocation5]   ;;  %s187_s14 = smov [#allocation2]  }
   0x3   :  { %s27_s13 = sshll.u32 %s186_s12, 4  ;;  %s17_s15 = sshll.u32 %s187_s14, 4  ;;  %s28_s13 = int_to_ptr.vmem [resolvable:$true] %s27_s13  ;;  %s18_s15 = int_to_ptr.vmem [resolvable:$true] %s17_s15 }
   0x4   :  { %s92_s18 = scalar_lea.hbm %s260_s1, 256 }
   0x5   :  { %p93_p0 = scmp.ne.s32.totalorder %s260_s1, %s92_s18  ;;  %p96_p1 = scmp.lt.u32.totalorder %s92_s18, %s260_s1 }
   0x7   :  { %p98_p2 = pnand %p96_p1, %p93_p0 }
   0x9   :  { %101 = shalt.err (!%p98_p2)
}
   0xa   :  { %s102_s23 = scalar_lea.vmem %s28_s13, 256  ;;  %p107_p4 = scmp.lt.s32.totalorder %s28_s13, %s28_s13 }
   0xb   :  { %p103_p3 = scmp.ne.s32.totalorder %s28_s13, %s102_s23  ;;  %p108_p5 = scmp.lt.s32.totalorder %s102_s23, %s102_s23 }
   0xd   :  { %p109_p6 = por %p108_p5, %p107_p4 }
   0xf   :  { %p110_p7 = pnand %p109_p6, %p103_p3 }
  0x11   :  { %113 = shalt.err (!%p110_p7)
}
  0x12   :  { %30 = dma.hbm_to_vmem [thread:$0]  %s260_s1, 256, %s28_s13, [#allocation6]  }
  0x13   :  { %s114_s28 = scalar_lea.hbm %s259_s0, 256 }
  0x14   :  { %p115_p8 = scmp.ne.s32.totalorder %s259_s0, %s114_s28  ;;  %p118_p9 = scmp.lt.u32.totalorder %s114_s28, %s259_s0 }
  0x16   :  { %p120_p10 = pnand %p118_p9, %p115_p8 }
  0x18   :  { %123 = shalt.err (!%p120_p10)
}
  0x19   :  { %s124_s6 = scalar_lea.vmem %s18_s15, 256  ;;  %p129_p12 = scmp.lt.s32.totalorder %s18_s15, %s18_s15 }
  0x1a   :  { %p125_p11 = scmp.ne.s32.totalorder %s18_s15, %s124_s6  ;;  %p130_p13 = scmp.lt.s32.totalorder %s124_s6, %s124_s6 }
  0x1c   :  { %p131_p0 = por %p130_p13, %p129_p12 }
  0x1e   :  { %p132_p1 = pnand %p131_p0, %p125_p11 }
  0x20   :  { %135 = shalt.err (!%p132_p1)
}
  0x21   :  { %20 = dma.hbm_to_vmem [thread:$0]  %s259_s0, 256, %s18_s15, [#allocation3]  }
  0x22   :  { %s188_s8 = smov [#allocation7]   ;;  %s136_s12 = scalar_lea.hbm %s261_s2, 128 }
  0x23   :  { %s37_s9 = sshll.u32 %s188_s8, 4  ;;  %p137_p2 = scmp.ne.s32.totalorder %s261_s2, %s136_s12  ;;  %s38_s9 = int_to_ptr.vmem [resolvable:$true] %s37_s9 }
  0x24   :  { %p140_p3 = scmp.lt.u32.totalorder %s136_s12, %s261_s2 }
  0x26   :  { %p142_p4 = pnand %p140_p3, %p137_p2 }
  0x28   :  { %145 = shalt.err (!%p142_p4)
}
  0x29   :  { %s146_s18 = scalar_lea.vmem %s38_s9, 128  ;;  %p151_p6 = scmp.lt.s32.totalorder %s38_s9, %s38_s9 }
  0x2a   :  { %p147_p5 = scmp.ne.s32.totalorder %s38_s9, %s146_s18  ;;  %p152_p7 = scmp.lt.s32.totalorder %s146_s18, %s146_s18 }
  0x2c   :  { %p153_p8 = por %p152_p7, %p151_p6 }
  0x2e   :  { %p154_p9 = pnand %p153_p8, %p147_p5 }
  0x30   :  { %157 = shalt.err (!%p154_p9)
}
  0x31   :  { %40 = dma.hbm_to_vmem [thread:$0]  %s261_s2, 128, %s38_s9, [#allocation6]  }
  0x32   :  { %180 = dma.done.wait [#allocation3], 256  }
  0x33   :  { %181 = vsyncadd [#allocation3], 4294967040 }
  0x34   :  { %182 = dma.done.wait [#allocation6], 384  }
  0x35   :  { %183 = vsyncadd [#allocation6], 4294966912  ;;  %v189_v0 = vmov 0   ;;  %v54_v1 = vld [vmem:[#allocation7] sm:$0xff]  ;;  %v51_v3 = vld [vmem:[#allocation2 + $0x8] sm:$0xff]  ;;  %s190_s19 = smov [#allocation8]  }
  0x36   :  { %91 = vset.pattern.permute.xlu0 %v189_v0  ;;  %v50_v2 = vld [vmem:[#allocation2] sm:$0xff]  ;;  %v52_v4 = vld [vmem:[#allocation5] sm:$0xff]  ;;  %v53_v5 = vld [vmem:[#allocation5 + $0x8] sm:$0xff]  ;;  %s76_s20 = sshll.u32 %s190_s19, 4  ;;  %s77_s20 = int_to_ptr.vmem [resolvable:$true] %s76_s20 }
  0x37   :  { %61 = vperm.xlu0 %91, %v54_v1   ;;  %v55_v6 = vsub.f32 %v50_v2, %v52_v4  ;;  %v56_v7 = vsub.f32 %v51_v3, %v53_v5  ;;  %s158_s2 = scalar_lea.vmem %s77_s20, 128  ;;  %p163_p11 = scmp.lt.s32.totalorder %s77_s20, %s77_s20 }
  0x38   :  { %p159_p10 = scmp.ne.s32.totalorder %s77_s20, %s158_s2  ;;  %p164_p12 = scmp.lt.s32.totalorder %s158_s2, %s158_s2 }
  0x39   :  { %v57_v8 = vand.u32 2147483647, %v55_v6  ;;  %v58_v9 = vand.u32 2147483647, %v56_v7 }
  0x3a   :  { %p165_p13 = por %p164_p12, %p163_p11 }
  0x3c   :  { %p166_p0 = pnand %p165_p13, %p159_p10 }
  0xb6   :  { %v62_v10 = vpop.permute.xlu0 %61 }
  0xb7   :  { %v64_v11 = vmul.f32 %v62_v10, %v57_v8  ;;  %v65_v12 = vmul.f32 %v62_v10, %v58_v9 }
  0xb9   :  { %v68_v13 = vadd.f32 %v65_v12, %v64_v11 }
  0xbb   :  { %69 = vst [vmem:[#allocation8] sm:$0xff] %v68_v13 }
  0xbc   :  { %169 = shalt.err (!%p166_p0)
}
  0xbd   :  { %s170_s23 = scalar_lea.hbm %s262_s3, 128 }
  0xbe   :  { %p171_p1 = scmp.ne.s32.totalorder %s262_s3, %s170_s23  ;;  %p174_p2 = scmp.lt.u32.totalorder %s170_s23, %s262_s3 }
  0xc0   :  { %p176_p3 = pnand %p174_p2, %p171_p1 }
  0xc2   :  { %179 = shalt.err (!%p176_p3)
}
  0xc3   :  { %79 = dma.vmem_to_hbm [thread:$0]  %s77_s20, 128, %s262_s3, [#allocation4]  }
  0xc4   :  { %184 = dma.done.wait [#allocation4], 128  }
  0xc5   :  { %185 = vsyncadd [#allocation4], 4294967168 }
  0xc6   :  { %83 = vsyncpa [#allocation3], 1 }
  0xc7   :  { %84 = vsyncpa [#allocation6], 1 }
  0xc8   :  { %85 = vsyncpa [#allocation4], 1 }

</bundles_post_ra>
